<compile_context>
chip_gen: v6e
topology: v6e:2x2x1
jax: 0.10.0
libtpu: 0.0.40
codegen_flags: <defaults>
</compile_context>

<pallas_src>
import functools

import jax
import jax.numpy as jnp
from jax.experimental import pallas as pl
from jax.experimental.pallas import tpu as pltpu

EPS = 1e-5                       # nn.BatchNorm2d default eps
MATMUL_DTYPE = jnp.bfloat16      # MXU operand dtype (accumulation stays f32)
VMEM_LIMIT = 32 * 1024 * 1024    # safe scoped-VMEM budget on v5e / v6e / v7x
MAX_TILE_ROWS = 512              # row-tile target (sized well under VMEM_LIMIT)


def _round_up(x, m):
    return (x + m - 1) // m * m


# ----------------------------- Pallas kernels --------------------------------
def _matmul_stats_kernel(lhs_ref, w_ref, pre_ref, sum_ref, sqs_ref):
    """Pass 1: fused conv/shortcut matmul + per-channel sum / sum-of-squares."""
    @pl.when(pl.program_id(0) == 0)
    def _():
        sum_ref[...] = jnp.zeros_like(sum_ref)
        sqs_ref[...] = jnp.zeros_like(sqs_ref)

    z = jnp.dot(lhs_ref[...], w_ref[...], preferred_element_type=jnp.float32)
    pre_ref[...] = z
    sum_ref[...] += jnp.sum(z, axis=0, keepdims=True)
    sqs_ref[...] += jnp.sum(z * z, axis=0, keepdims=True)


def _bn_relu_kernel(inv_m, pre_ref, sum_ref, sqs_ref, gamma_ref, beta_ref, y_ref):
    """Pass 2: training-mode BatchNorm (biased batch stats) + ReLU, all f32."""
    mean = sum_ref[...] * inv_m
    var = sqs_ref[...] * inv_m - mean * mean
    scale = gamma_ref[...] * jax.lax.rsqrt(var + EPS)
    shift = beta_ref[...] - mean * scale
    y_ref[...] = jnp.maximum(pre_ref[...] * scale + shift, 0.0)


# ------------------------------- glue ----------------------------------------
def _im2col_3x3(x, stride):
    # x: (N, H, W, C) -> (N*Ho*Wo, 9*C); tap order (dy, dx), channel fastest,
    # matching w.reshape(9*C, Cout) for HWIO weights.
    # TODO(synk): build the 9 taps in-kernel (halo tiles / shifted VMEM reads)
    # to avoid materialising the 9x-expanded patch matrix in HBM.
    N, H, W, C = x.shape
    Ho = (H - 1) // stride + 1
    Wo = (W - 1) // stride + 1
    xp = jnp.pad(x, ((0, 0), (1, 1), (1, 1), (0, 0)))
    taps = []
    for dy in range(3):
        for dx in range(3):
            taps.append(jax.lax.slice(
                xp,
                (0, dy, dx, 0),
                (N, dy + stride * (Ho - 1) + 1, dx + stride * (Wo - 1) + 1, C),
                (1, stride, stride, 1)))
    return jnp.concatenate(taps, axis=-1).reshape(N * Ho * Wo, 9 * C), Ho, Wo


def _fused_weight(p, in_c, out_c):
    # Block RHS [[w_rr, w_rt], [w_tr, w_tt]]; shortcut folded into the
    # centre-tap (dy=1, dx=1 -> tap index 4) rows of the residual->residual block.
    w_rr = p['w_rr'].reshape(9 * in_c, out_c)
    w_rt = p['w_rt'].reshape(9 * in_c, out_c)
    w_tt = p['w_tt'].reshape(9 * in_c, out_c)
    w_tr = p['w_tr'].reshape(9 * in_c, out_c)
    w_sc = p['w_sc'] if p['w_sc'] is not None else jnp.eye(in_c, out_c, dtype=jnp.float32)
    w_rr = w_rr.at[4 * in_c:5 * in_c, :].add(w_sc)
    top = jnp.concatenate([w_rr, w_rt], axis=1)   # (9*Cin, 2*Cout)
    bot = jnp.concatenate([w_tr, w_tt], axis=1)   # (9*Cin, 2*Cout)
    return jnp.concatenate([top, bot], axis=0)    # (18*Cin, 2*Cout)


def resnet_init_pallas(x_res, x_trans, p, stride):
    """One ResnetInit layer. x_res, x_trans: (N, H, W, Cin) NHWC float32."""
    N, H, W, Cin = x_res.shape
    Cout = p['w_rr'].shape[-1]
    C2 = 2 * Cout
    K = 18 * Cin

    pr, Ho, Wo = _im2col_3x3(x_res, stride)
    pt, _, _ = _im2col_3x3(x_trans, stride)
    M = N * Ho * Wo

    tm = min(MAX_TILE_ROWS, _round_up(M, 8))
    M_pad = _round_up(M, tm)
    nm = M_pad // tm

    lhs = jnp.concatenate([pr, pt], axis=1)              # (M, 18*Cin)
    if M_pad != M:
        # zero rows contribute 0 to sum/sumsq (no bias term) -> stats exact.
        lhs = jnp.pad(lhs, ((0, M_pad - M), (0, 0)))
    lhs = lhs.astype(MATMUL_DTYPE)

    w_f = _fused_weight(p, Cin, Cout).astype(MATMUL_DTYPE)     # (18*Cin, 2*Cout)
    gamma = jnp.concatenate([p['gamma_r'], p['gamma_t']]).reshape(1, C2)
    beta = jnp.concatenate([p['beta_r'], p['beta_t']]).reshape(1, C2)

    # --- pass 1: fused matmul + per-channel sum / sumsq (reduction over M) ---
    pre, zsum, zsqs = pl.pallas_call(
        _matmul_stats_kernel,
        grid=(nm,),
        in_specs=[
            pl.BlockSpec((tm, K), lambda i: (i, 0)),
            pl.BlockSpec((K, C2), lambda i: (0, 0)),
        ],
        out_specs=(
            pl.BlockSpec((tm, C2), lambda i: (i, 0)),
            pl.BlockSpec((1, C2), lambda i: (0, 0)),
            pl.BlockSpec((1, C2), lambda i: (0, 0)),
        ),
        out_shape=(
            jax.ShapeDtypeStruct((M_pad, C2), jnp.float32),
            jax.ShapeDtypeStruct((1, C2), jnp.float32),
            jax.ShapeDtypeStruct((1, C2), jnp.float32),
        ),
        compiler_params=pltpu.CompilerParams(
            dimension_semantics=("arbitrary",),
            vmem_limit_bytes=VMEM_LIMIT),
    )(lhs, w_f)

    # --- pass 2: BN apply (stats over the true M rows) + ReLU, fully parallel ---
    y = pl.pallas_call(
        functools.partial(_bn_relu_kernel, 1.0 / M),
        grid=(nm,),
        in_specs=[
            pl.BlockSpec((tm, C2), lambda i: (i, 0)),
            pl.BlockSpec((1, C2), lambda i: (0, 0)),
            pl.BlockSpec((1, C2), lambda i: (0, 0)),
            pl.BlockSpec((1, C2), lambda i: (0, 0)),
            pl.BlockSpec((1, C2), lambda i: (0, 0)),
        ],
        out_specs=pl.BlockSpec((tm, C2), lambda i: (i, 0)),
        out_shape=jax.ShapeDtypeStruct((M_pad, C2), jnp.float32),
        compiler_params=pltpu.CompilerParams(
            dimension_semantics=("parallel",),
            vmem_limit_bytes=VMEM_LIMIT),
    )(pre, zsum, zsqs, gamma, beta)

    y = y[:M]
    yr = y[:, :Cout].reshape(N, Ho, Wo, Cout)
    yt = y[:, Cout:].reshape(N, Ho, Wo, Cout)
    return yr, yt


def rir_block_pallas(x_res, x_trans, params, strides):
    for p, s in zip(params, strides):
        x_res, x_trans = resnet_init_pallas(x_res, x_trans, p, s)
    return x_res, x_trans


# ------------------------ pure-JAX reference (for check) ---------------------
def _ref_resnet_init(x_res, x_trans, p, stride):
    def conv3(x, w, b):
        y = jax.lax.conv_general_dilated(
            x, w, (stride, stride), ((1, 1), (1, 1)),
            dimension_numbers=('NHWC', 'HWIO', 'NHWC'))
        return y + b.reshape(1, 1, 1, -1)

    def bn_relu(x, g, b):
        m = x.mean(axis=(0, 1, 2), keepdims=True)
        v = jnp.square(x - m).mean(axis=(0, 1, 2), keepdims=True)
        y = (x - m) / jnp.sqrt(v + EPS) * g.reshape(1, 1, 1, -1) + b.reshape(1, 1, 1, -1)
        return jnp.maximum(y, 0.0)

    rr = conv3(x_res, p['w_rr'], p['b_rr'])
    rt = conv3(x_res, p['w_rt'], p['b_rt'])
    tt = conv3(x_trans, p['w_tt'], p['b_tt'])
    tr = conv3(x_trans, p['w_tr'], p['b_tr'])
    xs = x_res[:, ::stride, ::stride, :]
    if p['w_sc'] is not None:
        sc = xs @ p['w_sc'] + p['b_sc'].reshape(1, 1, 1, -1)
    else:
        sc = xs
    return (bn_relu(rr + tr + sc, p['gamma_r'], p['beta_r']),
            bn_relu(rt + tt, p['gamma_t'], p['beta_t']))


def rir_block_ref(x_res, x_trans, params, strides):
    for p, s in zip(params, strides):
        x_res, x_trans = _ref_resnet_init(x_res, x_trans, p, s)
    return x_res, x_trans


# ------------------------------ params ---------------------------------------
def init_resnet_init_params(key, in_c, out_c, stride):
    ks = jax.random.split(key, 14)
    conv_w = lambda k: 0.1 * jax.random.normal(k, (3, 3, in_c, out_c), jnp.float32)
    conv_b = lambda k: 0.1 * jax.random.normal(k, (out_c,), jnp.float32)
    p = dict(
        w_rr=conv_w(ks[0]), b_rr=conv_b(ks[1]),
        w_rt=conv_w(ks[2]), b_rt=conv_b(ks[3]),
        w_tt=conv_w(ks[4]), b_tt=conv_b(ks[5]),
        w_tr=conv_w(ks[6]), b_tr=conv_b(ks[7]),
        gamma_r=1.0 + 0.1 * jax.random.normal(ks[10], (out_c,), jnp.float32),
        beta_r=0.1 * jax.random.normal(ks[11], (out_c,), jnp.float32),
        gamma_t=1.0 + 0.1 * jax.random.normal(ks[12], (out_c,), jnp.float32),
        beta_t=0.1 * jax.random.normal(ks[13], (out_c,), jnp.float32),
    )
    if in_c != out_c or stride != 1:
        # nn.Conv2d(in, out, kernel_size=1, stride=stride) shortcut
        p['w_sc'] = 0.1 * jax.random.normal(ks[8], (in_c, out_c), jnp.float32)
        p['b_sc'] = 0.1 * jax.random.normal(ks[9], (out_c,), jnp.float32)
    else:
        # identity shortcut (folded into the fused weight as eye)
        p['w_sc'] = None
        p['b_sc'] = None
    return p


# ------------------------------- main -----------------------------------------
if __name__ == "__main__":
    key = jax.random.PRNGKey(0)
    k_in, k_par = jax.random.split(key)

    N, Cin, H, W = 2, 4, 16, 16
    Cout, layer_num, stride = 8, 2, 2

    # PyTorch-style NCHW inputs for the two streams (x_residual, x_transient)
    x_res_nchw = jax.random.normal(jax.random.fold_in(k_in, 0), (N, Cin, H, W), jnp.float32)
    x_tra_nchw = jax.random.normal(jax.random.fold_in(k_in, 1), (N, Cin, H, W), jnp.float32)
    # layout: convert NCHW -> NHWC for the kernel
    x_res = jnp.transpose(x_res_nchw, (0, 2, 3, 1))
    x_tra = jnp.transpose(x_tra_nchw, (0, 2, 3, 1))

    strides = [stride] + [1] * (layer_num - 1)
    params = []
    in_c = Cin
    for i, s in enumerate(strides):
        params.append(init_resnet_init_params(jax.random.fold_in(k_par, i), in_c, Cout, s))
        in_c = Cout

    yr, yt = rir_block_pallas(x_res, x_tra, params, strides)
    jax.block_until_ready((yr, yt))

    yr_ref, yt_ref = rir_block_ref(x_res, x_tra, params, strides)
    assert yr.shape == yr_ref.shape and yt.shape == yt_ref.shape

    # Tolerances reflect bf16 MXU operands (f32 accumulation, f32 BN/ReLU);
    # the max-error gate catches structural bugs, the mean gate systematic ones.
    err_r = jnp.abs(yr - yr_ref)
    err_t = jnp.abs(yt - yt_ref)
    assert jnp.allclose(yr, yr_ref, atol=5e-2, rtol=5e-2), float(jnp.max(err_r))
    assert jnp.allclose(yt, yt_ref, atol=5e-2, rtol=5e-2), float(jnp.max(err_t))
    assert float(jnp.mean(err_r)) < 1e-2 and float(jnp.mean(err_t)) < 1e-2

    print("KERNEL_OK")
</pallas_src>

<mosaic_0001>
module attributes {stable_mosaic.version = 11 : i64} {
  func.func @_matmul_stats_kernel(%arg0: i32, %arg1: memref<128x72xbf16, #tpu.memory_space<vmem>>, %arg2: memref<72x16xbf16, #tpu.memory_space<vmem>>, %arg3: memref<128x16xf32, #tpu.memory_space<vmem>>, %arg4: memref<1x16xf32, #tpu.memory_space<vmem>>, %arg5: memref<1x16xf32, #tpu.memory_space<vmem>>) attributes {dimension_semantics = [#tpu.dimension_semantics<arbitrary>], iteration_bounds = array<i64: 1>, scalar_prefetch = 0 : i64, scratch_operands = 0 : i64, tpu.core_type = #tpu.core_type<tc>, window_params = [{transform_indices = @transform_0, window_bounds = array<i64: 128, 72>}, {pipeline_mode = #tpu.pipeline_mode<synchronous>, transform_indices = @transform_1, window_bounds = array<i64: 72, 16>}, {transform_indices = @transform_2, window_bounds = array<i64: 128, 16>}, {pipeline_mode = #tpu.pipeline_mode<synchronous>, transform_indices = @transform_3, window_bounds = array<i64: 1, 16>}, {pipeline_mode = #tpu.pipeline_mode<synchronous>, transform_indices = @transform_4, window_bounds = array<i64: 1, 16>}]} {
    %c0_i32 = arith.constant 0 : i32
    %0 = arith.cmpi eq, %arg0, %c0_i32 : i32
    %1 = arith.extui %0 : i1 to i32
    %c0_i32_0 = arith.constant 0 : i32
    %2 = arith.cmpi ne, %1, %c0_i32_0 : i32
    scf.if %2 {
      %cst_16 = arith.constant 0.000000e+00 : f32
      %18 = vector.broadcast %cst_16 : f32 to vector<1x16xf32>
      %c0_17 = arith.constant 0 : index
      %c0_18 = arith.constant 0 : index
      %19 = vector.load %arg4[%c0_17, %c0_18] : memref<1x16xf32, #tpu.memory_space<vmem>>, vector<1x16xf32>
      tpu.vector_store %arg4[%c0_17, %c0_18], %18 {strides = array<i32>} : memref<1x16xf32, #tpu.memory_space<vmem>>, vector<1x16xf32>,
      %cst_19 = arith.constant 0.000000e+00 : f32
      %20 = vector.broadcast %cst_19 : f32 to vector<1x16xf32>
      %c0_20 = arith.constant 0 : index
      %c0_21 = arith.constant 0 : index
      %21 = vector.load %arg5[%c0_20, %c0_21] : memref<1x16xf32, #tpu.memory_space<vmem>>, vector<1x16xf32>
      tpu.vector_store %arg5[%c0_20, %c0_21], %20 {strides = array<i32>} : memref<1x16xf32, #tpu.memory_space<vmem>>, vector<1x16xf32>,
    } else {
    }
    %c0 = arith.constant 0 : index
    %c0_1 = arith.constant 0 : index
    %3 = vector.load %arg1[%c0, %c0_1] : memref<128x72xbf16, #tpu.memory_space<vmem>>, vector<128x72xbf16>
    %c0_2 = arith.constant 0 : index
    %c0_3 = arith.constant 0 : index
    %4 = vector.load %arg2[%c0_2, %c0_3] : memref<72x16xbf16, #tpu.memory_space<vmem>>, vector<72x16xbf16>
    %cst = arith.constant dense<0.000000e+00> : vector<128x16xf32>
    %5 = tpu.matmul %3, %4, %cst {dimension_numbers = #tpu.dot_dimension_numbers<[1], [0], [0], [1], [0, 0, 1, 1], [], []>} : vector<128x72xbf16>, vector<72x16xbf16>, vector<128x16xf32> -> vector<128x16xf32>
    %c0_4 = arith.constant 0 : index
    %c0_5 = arith.constant 0 : index
    %6 = vector.load %arg3[%c0_4, %c0_5] : memref<128x16xf32, #tpu.memory_space<vmem>>, vector<128x16xf32>
    tpu.vector_store %arg3[%c0_4, %c0_5], %5 {strides = array<i32>} : memref<128x16xf32, #tpu.memory_space<vmem>>, vector<128x16xf32>,
    %c0_6 = arith.constant 0 : index
    %c0_7 = arith.constant 0 : index
    %7 = vector.load %arg4[%c0_6, %c0_7] : memref<1x16xf32, #tpu.memory_space<vmem>>, vector<1x16xf32>
    %cst_8 = arith.constant dense<0.000000e+00> : vector<16xf32>
    %8 = vector.multi_reduction <add>, %5, %cst_8 [0] : vector<128x16xf32> to vector<16xf32>
    %9 = vector.shape_cast %8 : vector<16xf32> to vector<1x16xf32>
    %10 = arith.addf %7, %9 : vector<1x16xf32>
    %c0_9 = arith.constant 0 : index
    %c0_10 = arith.constant 0 : index
    %11 = vector.load %arg4[%c0_9, %c0_10] : memref<1x16xf32, #tpu.memory_space<vmem>>, vector<1x16xf32>
    tpu.vector_store %arg4[%c0_9, %c0_10], %10 {strides = array<i32>} : memref<1x16xf32, #tpu.memory_space<vmem>>, vector<1x16xf32>,
    %c0_11 = arith.constant 0 : index
    %c0_12 = arith.constant 0 : index
    %12 = vector.load %arg5[%c0_11, %c0_12] : memref<1x16xf32, #tpu.memory_space<vmem>>, vector<1x16xf32>
    %13 = arith.mulf %5, %5 : vector<128x16xf32>
    %cst_13 = arith.constant dense<0.000000e+00> : vector<16xf32>
    %14 = vector.multi_reduction <add>, %13, %cst_13 [0] : vector<128x16xf32> to vector<16xf32>
    %15 = vector.shape_cast %14 : vector<16xf32> to vector<1x16xf32>
    %16 = arith.addf %12, %15 : vector<1x16xf32>
    %c0_14 = arith.constant 0 : index
    %c0_15 = arith.constant 0 : index
    %17 = vector.load %arg5[%c0_14, %c0_15] : memref<1x16xf32, #tpu.memory_space<vmem>>, vector<1x16xf32>
    tpu.vector_store %arg5[%c0_14, %c0_15], %16 {strides = array<i32>} : memref<1x16xf32, #tpu.memory_space<vmem>>, vector<1x16xf32>,
    return
  }
  func.func @transform_0(%arg0: i32) -> (i32, i32) {
    %c0_i32 = arith.constant 0 : i32
    %c0_i32_0 = arith.constant 0 : i32
    return %arg0, %c0_i32 : i32, i32
  }
  func.func @transform_1(%arg0: i32) -> (i32, i32) {
    %c0_i32 = arith.constant 0 : i32
    %c0_i32_0 = arith.constant 0 : i32
    %c0_i32_1 = arith.constant 0 : i32
    return %c0_i32, %c0_i32_0 : i32, i32
  }
  func.func @transform_2(%arg0: i32) -> (i32, i32) {
    %c0_i32 = arith.constant 0 : i32
    %c0_i32_0 = arith.constant 0 : i32
    return %arg0, %c0_i32 : i32, i32
  }
  func.func @transform_3(%arg0: i32) -> (i32, i32) {
    %c0_i32 = arith.constant 0 : i32
    %c0_i32_0 = arith.constant 0 : i32
    %c0_i32_1 = arith.constant 0 : i32
    return %c0_i32, %c0_i32_0 : i32, i32
  }
  func.func @transform_4(%arg0: i32) -> (i32, i32) {
    %c0_i32 = arith.constant 0 : i32
    %c0_i32_0 = arith.constant 0 : i32
    %c0_i32_1 = arith.constant 0 : i32
    return %c0_i32, %c0_i32_0 : i32, i32
  }
}

</mosaic_0001>

<bundles_post_ra>
// kernel: tpu_custom_call.1
= control target key start
LH: loop header
LB: loop body
LE: loop exit
PB: predicated region body
PF: predicated region fallthrough
CT: control target
= control target key end

     0   :  { %10 = vsyncpa [#allocation3], 0  ;;  %vm141_vm0 = vcmask 1043456   ;;  %vm116_vm1 = vcmask 588800   ;;  %s731_s0 = inlined_call_operand.vmem [shape: bf16[128,72], index: 0, kind: input, shape index: {}]   ;;  %s732_s1 = inlined_call_operand.vmem [shape: bf16[72,16], index: 1, kind: input, shape index: {}]   ;;  %s733_s2 = inlined_call_operand.vmem [shape: f32[128,16], index: 2, kind: output, shape index: {0}]   ;;  %s734_s3 = inlined_call_operand.hbm [shape: f32[1,16], index: 3, kind: output, shape index: {1}]   ;;  %s735_s4 = inlined_call_operand.hbm [shape: f32[1,16], index: 4, kind: output, shape index: {2}]  }
   0x1   :  { %v463_v0 = vld [vmem:[%s732_s1 + $0x20] ss:$0 sps:$4 sm:$0xff]   ;;  %v464_v1 = vld [vmem:[%s732_s1 + $0x18] sm:$0xff]   ;;  %v465_v3 = vld [vmem:[%s732_s1 + $0x10] sm:$0xff]  }
   0x2   :  { %458 = vmatprep.subr.msk.bf16.mxu0 %vm141_vm0, %v463_v0  ;;  %v143_v2 = vsel %vm141_vm0, %v463_v0, 0  ;;  %459 = vmatprep.subr.msk.bf16.mxu1 %vm141_vm0, %v463_v0  ;;  %v468_v4 = vld [vmem:[%s731_s0] sm:$0xff]   ;;  %v466_v5 = vld [vmem:[%s732_s1 + $0x8] sm:$0xff]  }
   0x3   :  { %423 = vmatpush3.bf16.msra.mxu0 %v143_v2  ;;  %453 = vmatpush3.bf16.msra.mxu1 %v143_v2  ;;  %v472_v6 = vld [vmem:[%s731_s0 + $0x20] sm:$0xff]  }
   0x4   :  { %424 = vmatprep.subr.bf16.mxu0 %v464_v1  ;;  %449 = vmatprep.subr.bf16.mxu1 %v464_v1  ;;  %v467_v7 = vld [vmem:[%s732_s1] sm:$0xff]  }
   0x5   :  { %432 = vmatprep.mubr.msk.bf16.mxu0 %vm116_vm1, %v468_v4 }
   0x7   :  { %425 = vmatpush3.bf16.msra.mxu0 %v464_v1  ;;  %454 = vmatpush3.bf16.msra.mxu1 %v464_v1 }
   0x8   :  { %426 = vmatprep.subr.bf16.mxu0 %v465_v3  ;;  %450 = vmatprep.subr.bf16.mxu1 %v465_v3 }
   0xb   :  { %427 = vmatpush3.bf16.msra.mxu0 %v465_v3  ;;  %455 = vmatpush3.bf16.msra.mxu1 %v465_v3 }
   0xc   :  { %428 = vmatprep.subr.bf16.mxu0 %v466_v5  ;;  %451 = vmatprep.subr.bf16.mxu1 %v466_v5 }
   0xd   :  { %11 = vsyncpa [#allocation5], 0  ;;  %440 = vmatprep.mubr.msk.bf16.mxu1 %vm116_vm1, %v472_v6  ;;  %v469_v8 = vld [vmem:[%s731_s0 + $0x8] sm:$0xff]   ;;  %v470_v10 = vld [vmem:[%s731_s0 + $0x10] sm:$0xff]   ;;  %vm21_vm2 = vcmask 122880   ;;  %v520_v14 = vmov 0.0  }
   0xe   :  { %v473_v9 = vld [vmem:[%s731_s0 + $0x28] sm:$0xff]   ;;  %v474_v11 = vld [vmem:[%s731_s0 + $0x30] sm:$0xff]   ;;  %v471_v12 = vld [vmem:[%s731_s0 + $0x18] sm:$0xff]   ;;  %22 = vst.msk [vmem:[#allocation2] sm:$0x1] %vm21_vm2, %v520_v14  ;;  %vm242_vm3 = vcmask 130048  }
   0xf   :  { %429 = vmatpush3.bf16.msra.mxu0 %v466_v5  ;;  %456 = vmatpush3.bf16.msra.mxu1 %v466_v5  ;;  %v475_v13 = vld [vmem:[%s731_s0 + $0x38] sm:$0xff]   ;;  %23 = vst.msk [vmem:[#allocation4] sm:$0x1] %vm21_vm2, %v520_v14  ;;  %s522_s18 = smov [#allocation4]  }
  0x10   :  { %430 = vmatprep.subr.bf16.mxu0 %v467_v7  ;;  %452 = vmatprep.subr.bf16.mxu1 %v467_v7  ;;  %s374_s19 = sshll.u32 %s522_s18, 4  ;;  %s375_s19 = int_to_ptr.vmem [resolvable:$true] %s374_s19 }
  0x13   :  { %431 = vmatpush3.bf16.msra.mxu0 %v467_v7  ;;  %457 = vmatpush3.bf16.msra.mxu1 %v467_v7 }
  0x16   :  { %433 = vmatmul.mubr.msk.bf16.vlgmr.msra.gmra.mxu0 %vm116_vm1, %v469_v8  ;;  %441 = vmatmul.mubr.msk.bf16.vlgmr.msra.gmra.mxu1 %vm116_vm1, %v473_v9 }
  0x17   :  { %436 = vmatprep.mubr.msk.bf16.mxu0 %vm116_vm1, %v470_v10  ;;  %444 = vmatprep.mubr.msk.bf16.mxu1 %vm116_vm1, %v474_v11 }
  0x1e   :  { %437 = vmatmul.mubr.msk.bf16.gmra.mxu0 %vm116_vm1, %v471_v12  ;;  %445 = vmatmul.mubr.msk.bf16.gmra.mxu1 %vm116_vm1, %v475_v13 }
  0xd6   :  { %v434_v15 = vpop.f32.mrf.mxu0  ;;  %v597_v16 = vpop.f32.mrf.mxu1 }
  0xd7   :  { %245 = vst.msk [vmem:[%s733_s2 + $0x10] sm:$0xff] %vm242_vm3, %v434_v15  ;;  %253 = vst.msk [vmem:[%s733_s2 + $0x50] sm:$0xff] %vm242_vm3, %v597_v16  ;;  %v303_v24 = vmul.f32 %v434_v15, %v434_v15  ;;  %v263_v31 = vsel %vm242_vm3, %v434_v15, 0.0  ;;  %v311_v9 = vmul.f32 %v597_v16, %v597_v16  ;;  %v279_v14 = vsel %vm242_vm3, %v597_v16, 0.0 }
  0xd8   :  { %v179_v17 = vpop.f32.mrf.mxu0  ;;  %v608_v18 = vpop.f32.mrf.mxu1 }
  0xd9   :  { %243 = vst.msk [vmem:[%s733_s2] sm:$0xff] %vm242_vm3, %v179_v17  ;;  %251 = vst.msk [vmem:[%s733_s2 + $0x40] sm:$0xff] %vm242_vm3, %v608_v18  ;;  %v301_v21 = vmul.f32 %v179_v17, %v179_v17  ;;  %v260_v25 = vsel %vm242_vm3, %v179_v17, 0.0  ;;  %v320_v39 = vsel %vm242_vm3, %v303_v24, 0.0  ;;  %v309_v1 = vmul.f32 %v608_v18, %v608_v18 }
  0xda   :  { %v435_v19 = vpop.f32.mrf.mxu0  ;;  %v619_v20 = vpop.f32.mrf.mxu1  ;;  %v275_v5 = vsel %vm242_vm3, %v608_v18, 0.0 }
  0xdb   :  { %246 = vst.msk [vmem:[%s733_s2 + $0x18] sm:$0xff] %vm242_vm3, %v435_v19  ;;  %254 = vst.msk [vmem:[%s733_s2 + $0x58] sm:$0xff] %vm242_vm3, %v619_v20  ;;  %v317_v32 = vsel %vm242_vm3, %v301_v21, 0.0  ;;  %v304_v33 = vmul.f32 %v435_v19, %v435_v19  ;;  %v265_v40 = vsel %vm242_vm3, %v435_v19, 0.0  ;;  %v332_v10 = vsel %vm242_vm3, %v309_v1, 0.0 }
  0xdc   :  { %v182_v22 = vpop.f32.mrf.mxu0  ;;  %v214_v23 = vpop.f32.mrf.mxu1  ;;  %v312_v15 = vmul.f32 %v619_v20, %v619_v20  ;;  %v336_v21 = vsel %vm242_vm3, %v311_v9, 0.0 }
  0xdd   :  { %244 = vst.msk [vmem:[%s733_s2 + $0x8] sm:$0xff] %vm242_vm3, %v182_v22  ;;  %v261_v26 = vsel %vm242_vm3, %v182_v22, 0.0  ;;  %v302_v27 = vmul.f32 %v182_v22, %v182_v22  ;;  %252 = vst.msk [vmem:[%s733_s2 + $0x48] sm:$0xff] %vm242_vm3, %v214_v23  ;;  %v322_v46 = vsel %vm242_vm3, %v304_v33, 0.0  ;;  %v310_v6 = vmul.f32 %v214_v23, %v214_v23 }
  0xde   :  { %v262_v28 = vadd.f32 %v261_v26, %v260_v25  ;;  %v438_v29 = vpop.f32.mrf.mxu0  ;;  %v640_v30 = vpop.f32.mrf.mxu1  ;;  %v277_v11 = vsel %vm242_vm3, %v214_v23, 0.0  ;;  %v281_v22 = vsel %vm242_vm3, %v619_v20, 0.0  ;;  %v338_v26 = vsel %vm242_vm3, %v312_v15, 0.0 }
  0xdf   :  { %v318_v34 = vsel %vm242_vm3, %v302_v27, 0.0  ;;  %249 = vst.msk [vmem:[%s733_s2 + $0x30] sm:$0xff] %vm242_vm3, %v438_v29  ;;  %257 = vst.msk [vmem:[%s733_s2 + $0x70] sm:$0xff] %vm242_vm3, %v640_v30  ;;  %v307_v52 = vmul.f32 %v438_v29, %v438_v29  ;;  %v271_v58 = vsel %vm242_vm3, %v438_v29, 0.0  ;;  %v334_v17 = vsel %vm242_vm3, %v310_v6, 0.0 }
  0xe0   :  { %v264_v35 = vadd.f32 %v263_v31, %v262_v28  ;;  %v319_v36 = vadd.f32 %v318_v34, %v317_v32  ;;  %v195_v37 = vpop.f32.mrf.mxu0  ;;  %v227_v38 = vpop.f32.mrf.mxu1  ;;  %v315_v31 = vmul.f32 %v640_v30, %v640_v30  ;;  %v287_v20 = vsel %vm242_vm3, %v640_v30, 0.0 }
  0xe1   :  { %247 = vst.msk [vmem:[%s733_s2 + $0x20] sm:$0xff] %vm242_vm3, %v195_v37  ;;  %v305_v41 = vmul.f32 %v195_v37, %v195_v37  ;;  %255 = vst.msk [vmem:[%s733_s2 + $0x60] sm:$0xff] %vm242_vm3, %v227_v38  ;;  %v267_v47 = vsel %vm242_vm3, %v195_v37, 0.0  ;;  %v328_v63 = vsel %vm242_vm3, %v307_v52, 0.0  ;;  %v313_v24 = vmul.f32 %v227_v38, %v227_v38 }
  0xe2   :  { %v321_v42 = vadd.f32 %v320_v39, %v319_v36  ;;  %v266_v43 = vadd.f32 %v265_v40, %v264_v35  ;;  %v439_v44 = vpop.f32.mrf.mxu0  ;;  %v664_v45 = vpop.f32.mrf.mxu1  ;;  %v283_v27 = vsel %vm242_vm3, %v227_v38, 0.0  ;;  %v344_v40 = vsel %vm242_vm3, %v315_v31, 0.0 }
  0xe3   :  { %250 = vst.msk [vmem:[%s733_s2 + $0x38] sm:$0xff] %vm242_vm3, %v439_v44  ;;  %258 = vst.msk [vmem:[%s733_s2 + $0x78] sm:$0xff] %vm242_vm3, %v664_v45  ;;  %v324_v53 = vsel %vm242_vm3, %v305_v41, 0.0  ;;  %v308_v59 = vmul.f32 %v439_v44, %v439_v44  ;;  %v273_v0 = vsel %vm242_vm3, %v439_v44, 0.0  ;;  %v340_v32 = vsel %vm242_vm3, %v313_v24, 0.0 }
  0xe4   :  { %v268_v48 = vadd.f32 %v267_v47, %v266_v43  ;;  %v323_v49 = vadd.f32 %v322_v46, %v321_v42  ;;  %v198_v50 = vpop.f32.mrf.mxu0  ;;  %v230_v51 = vpop.f32.mrf.mxu1  ;;  %v316_v36 = vmul.f32 %v664_v45, %v664_v45  ;;  %v289_v41 = vsel %vm242_vm3, %v664_v45, 0.0  ;;  %v300_v45 = vld [vmem:[#allocation4] sm:$0x1] }
  0xe5   :  { %248 = vst.msk [vmem:[%s733_s2 + $0x28] sm:$0xff] %vm242_vm3, %v198_v50  ;;  %v269_v54 = vsel %vm242_vm3, %v198_v50, 0.0  ;;  %v306_v55 = vmul.f32 %v198_v50, %v198_v50  ;;  %256 = vst.msk [vmem:[%s733_s2 + $0x68] sm:$0xff] %vm242_vm3, %v230_v51  ;;  %v330_v4 = vsel %vm242_vm3, %v308_v59, 0.0  ;;  %v314_v16 = vmul.f32 %v230_v51, %v230_v51  ;;  %s521_s2 = smov [#allocation2]  }
  0xe6   :  { %v325_v56 = vadd.f32 %v324_v53, %v323_v49  ;;  %v270_v57 = vadd.f32 %v269_v54, %v268_v48  ;;  %v285_v33 = vsel %vm242_vm3, %v230_v51, 0.0  ;;  %v346_v44 = vsel %vm242_vm3, %v316_v36, 0.0  ;;  %s364_s17 = sshll.u32 %s521_s2, 4  ;;  %s365_s17 = int_to_ptr.vmem [resolvable:$true] %s364_s17 }
  0xe7   :  { %v326_v60 = vsel %vm242_vm3, %v306_v55, 0.0  ;;  %v342_v37 = vsel %vm242_vm3, %v314_v16, 0.0  ;;  %v259_v55 = vld [vmem:[#allocation2] sm:$0x1]  ;;  %s476_s20 = scalar_lea.vmem %s365_s17, 16  ;;  %s480_s21 = scalar_lea.vmem %s365_s17, 32 }
  0xe8   :  { %v272_v61 = vadd.f32 %v271_v58, %v270_v57  ;;  %v327_v62 = vadd.f32 %v326_v60, %v325_v56  ;;  %p477_p0 = scmp.ne.s32.totalorder %s365_s17, %s476_s20  ;;  %p481_p1 = scmp.lt.s32.totalorder %s365_s17, %s365_s17 }
  0xe9   :  { %p482_p2 = scmp.lt.s32.totalorder %s480_s21, %s476_s20 }
  0xea   :  { %v274_v2 = vadd.f32 %v273_v0, %v272_v61  ;;  %v329_v3 = vadd.f32 %v328_v63, %v327_v62 }
  0xeb   :  { %p483_p3 = por %p482_p2, %p481_p1 }
  0xec   :  { %v331_v7 = vadd.f32 %v330_v4, %v329_v3  ;;  %v276_v8 = vadd.f32 %v275_v5, %v274_v2 }
  0xed   :  { %p484_p4 = pnand %p483_p3, %p477_p0 }
  0xee   :  { %v278_v12 = vadd.f32 %v277_v11, %v276_v8  ;;  %v333_v13 = vadd.f32 %v332_v10, %v331_v7 }
  0xf0   :  { %v280_v18 = vadd.f32 %v279_v14, %v278_v12  ;;  %v335_v19 = vadd.f32 %v334_v17, %v333_v13 }
  0xf2   :  { %v337_v25 = vadd.f32 %v336_v21, %v335_v19  ;;  %v282_v23 = vadd.f32 %v281_v22, %v280_v18 }
  0xf4   :  { %v284_v28 = vadd.f32 %v283_v27, %v282_v23  ;;  %v339_v29 = vadd.f32 %v338_v26, %v337_v25 }
  0xf6   :  { %v341_v34 = vadd.f32 %v340_v32, %v339_v29  ;;  %v286_v35 = vadd.f32 %v285_v33, %v284_v28 }
  0xf8   :  { %v288_v38 = vadd.f32 %v287_v20, %v286_v35  ;;  %v343_v39 = vadd.f32 %v342_v37, %v341_v34 }
  0xfa   :  { %v290_v42 = vadd.f32 %v289_v41, %v288_v38  ;;  %v345_v43 = vadd.f32 %v344_v40, %v343_v39 }
  0xfc   :  { %v291_v46 = vrot.slane %v290_v42, 4  ;;  %v347_v47 = vadd.f32 %v346_v44, %v345_v43 }
  0xfe   :  { %v292_v48 = vadd.f32 %v291_v46, %v290_v42  ;;  %v348_v30 = vrot.slane %v347_v47, 4 }
 0x100   :  { %v293_v49 = vrot.slane %v292_v48, 2  ;;  %v349_v50 = vadd.f32 %v348_v30, %v347_v47 }
 0x102   :  { %v294_v51 = vadd.f32 %v293_v49, %v292_v48  ;;  %v350_v52 = vrot.slane %v349_v50, 2 }
 0x104   :  { %v295_v53 = vrot.slane %v294_v51, 1  ;;  %v351_v54 = vadd.f32 %v350_v52, %v349_v50 }
 0x106   :  { %v296_v56 = vadd.f32 %v295_v53, %v294_v51  ;;  %v352_v57 = vrot.slane %v351_v54, 1 }
 0x108   :  { %v297_v58 = vadd.f32 %v296_v56, %v259_v55  ;;  %v353_v59 = vadd.f32 %v352_v57, %v351_v54 }
 0x10a   :  { %299 = vst.msk [vmem:[#allocation2] sm:$0x1] %vm21_vm2, %v297_v58  ;;  %v354_v60 = vadd.f32 %v353_v59, %v300_v45 }
 0x10b   :  { %487 = shalt.err (!%p484_p4)
}
 0x10c   :  { %367 = dma.vmem_to_hbm [thread:$0]  %s365_s17, 16, %s734_s3, [#allocation3]   ;;  %355 = vst.msk [vmem:[#allocation4] sm:$0x1] %vm21_vm2, %v354_v60 }
 0x10d   :  { %s496_s24 = scalar_lea.vmem %s375_s19, 16  ;;  %s500_s25 = scalar_lea.vmem %s375_s19, 32 }
 0x10e   :  { %p497_p5 = scmp.ne.s32.totalorder %s375_s19, %s496_s24  ;;  %p501_p6 = scmp.lt.s32.totalorder %s375_s19, %s375_s19 }
 0x10f   :  { %p502_p7 = scmp.lt.s32.totalorder %s500_s25, %s496_s24 }
 0x111   :  { %p503_p8 = por %p502_p7, %p501_p6 }
 0x113   :  { %p504_p9 = pnand %p503_p8, %p497_p5 }
 0x115   :  { %507 = shalt.err (!%p504_p9)
}
 0x116   :  { %377 = dma.vmem_to_hbm [thread:$0]  %s375_s19, 16, %s735_s4, [#allocation5]  }
 0x117   :  { %516 = dma.done.wait [#allocation3], 16  }
 0x118   :  { %517 = vsyncadd [#allocation3], 4294967280 }
 0x119   :  { %518 = dma.done.wait [#allocation5], 16  }
 0x11a   :  { %519 = vsyncadd [#allocation5], 4294967280 }
 0x11b   :  { %386 = vsyncpa [#allocation3], 1 }
 0x11c   :  { %387 = vsyncpa [#allocation5], 1 }

</bundles_post_ra>
